<compile_context>
chip_gen: v6e
topology: v6e:2x2x1
jax: 0.10.0
libtpu: 0.0.40
codegen_flags: <defaults>
</compile_context>

<pallas_src>
import math
import jax
import jax.numpy as jnp
from jax.experimental import pallas as pl
from jax.experimental.pallas import tpu as pltpu

HIDDEN = 32
INPUT = 1


def rnn_kernel(x_ref, wih_ref, whh_ref, b_ref, h0_ref, wd_ref, bd_ref,
               y_ref, h_ref):
    """Full RNN recurrence with fused dense head, single block, no scratch.

    x_ref  : (B, T)  input (feature dim squeezed, I == 1)
    wih    : (1, H)  input->hidden weight row (== w_ih.T for I == 1)
    whh    : (H, H)  hidden->hidden weight (transposed)
    b      : (1, H)  combined b_ih + b_hh
    h0     : (B, H)  initial hidden state (donated to h_ref when fresh)
    wd     : (1, H)  dense weight row
    bd     : (1, 1)  dense bias
    y_ref  : (B, T)  tanh(dense(h_t)) for every t
    h_ref  : (B, H)  final hidden state
    """
    B, T = x_ref.shape
    x = x_ref[...]                      # (B, T)
    wih = wih_ref[...]                  # (1, H)
    whh = whh_ref[...]                  # (H, H)
    b = b_ref[...]                      # (1, H)
    wd = wd_ref[...]                    # (1, H)
    bd = bd_ref[...]                    # (1, 1)

    # Hoisted input projection: T separate (B, H) slabs (loop is fully unrolled),
    # pre_t = x[:, t] * w_ih + (b_ih + b_hh).  VPU-only, done once, no (B,T,H) scratch.
    pre = [x[:, t:t + 1] * wih + b for t in range(T)]          # T x (B, H)

    h = h0_ref[...]                                            # (B, H)
    ys = []
    for t in range(T):                                         # T static & small -> unrolled
        # serial critical path per step: h @ whh (MXU) -> add -> tanh (EUP)
        h = jnp.tanh(pre[t] + jnp.dot(h, whh, preferred_element_type=jnp.float32))
        # fused output head: VPU mul + XLU lane reduce + EUP tanh, off the h-chain,
        # hides under the next step's matmul latency.
        ys.append(jnp.tanh(jnp.sum(h * wd, axis=-1, keepdims=True) + bd))   # (B, 1)

    h_ref[...] = h                                             # final hidden state
    y_ref[...] = jnp.concatenate(ys, axis=1)                   # single (B, T) store

    # TODO(synk): on v5e/v6e, stage whh once in MXU weight registers via
    # pltpu.matmul_push_rhs / matmul_acc_lhs / matmul_pop to drop the per-step RHS push
    # from the serial chain; kept on jnp.dot here for portability/robustness.


def rnn_forward(x, params, prev_hidden=None):
    """Pallas equivalent of RNN.forward(x, prev_hidden).

    x           : (batch, seq, 1) float32
    prev_hidden : None or (1, batch, hidden)
    returns (y_out (batch, seq, 1), h_state (1, batch, hidden))
    """
    B, T, I = x.shape
    H = params["w_hh"].shape[0]

    fresh_h0 = prev_hidden is None
    if fresh_h0:
        h0 = jnp.zeros((B, H), jnp.float32)
    else:
        h0 = prev_hidden.reshape(B, H).astype(jnp.float32)

    if T == 0:  # degenerate sequence: nothing to run
        return jnp.zeros((B, 0, 1), jnp.float32), h0[None, :, :]

    x2d = x[:, :, 0].astype(jnp.float32)                        # (B, T), I == 1
    wih = params["w_ih"].reshape(1, H).astype(jnp.float32)      # (1, H)
    whh = params["w_hh"].T.astype(jnp.float32)                  # (H, H)
    b = (params["b_ih"] + params["b_hh"]).reshape(1, H).astype(jnp.float32)
    wd = params["w_d"].reshape(1, H).astype(jnp.float32)        # (1, H)
    bd = params["b_d"].reshape(1, 1).astype(jnp.float32)        # (1, 1)

    vmem = pl.BlockSpec(memory_space=pltpu.MemorySpace.VMEM)
    y2d, h_fin = pl.pallas_call(
        rnn_kernel,
        out_shape=(jax.ShapeDtypeStruct((B, T), jnp.float32),
                   jax.ShapeDtypeStruct((B, H), jnp.float32)),
        in_specs=[vmem] * 7,
        out_specs=(vmem, vmem),
        # Donate the h0 buffer only when it was freshly created here; never invalidate a
        # caller-owned prev_hidden buffer.
        input_output_aliases=({4: 1} if fresh_h0 else {}),
    )(x2d, wih, whh, b, h0, wd, bd)

    y_out = y2d[:, :, None]               # (B, T, 1) — metadata reshape only
    h_state = h_fin[None, :, :]           # (1, B, H)
    return y_out, h_state


def init_params(key, hidden=HIDDEN, inp=INPUT):
    """Deterministic parameter init mimicking PyTorch defaults."""
    k = 1.0 / math.sqrt(hidden)
    ks = jax.random.split(key, 6)
    params = {
        "w_ih": jax.random.uniform(ks[0], (hidden, inp), jnp.float32, -k, k),
        "w_hh": jax.random.uniform(ks[1], (hidden, hidden), jnp.float32, -k, k),
        "b_ih": jax.random.uniform(ks[2], (hidden,), jnp.float32, -k, k),
        "b_hh": jax.random.uniform(ks[3], (hidden,), jnp.float32, -k, k),
        # dense.weight.data.normal_(0, 0.1) in the PyTorch module
        "w_d": 0.1 * jax.random.normal(ks[4], (1, hidden), jnp.float32),
        "b_d": jax.random.uniform(ks[5], (1,), jnp.float32, -k, k),
    }
    return params


def rnn_reference(x, params, prev_hidden=None):
    """Pure-JAX reference for correctness checking."""
    B, T, I = x.shape
    H = params["w_hh"].shape[0]
    h = jnp.zeros((B, H), jnp.float32) if prev_hidden is None else prev_hidden.reshape(B, H)
    wih, whh = params["w_ih"].T, params["w_hh"].T
    b = (params["b_ih"] + params["b_hh"])[None, :]
    wd, bd = params["w_d"].T, params["b_d"][None, :]
    ys = []
    for t in range(T):
        h = jnp.tanh(x[:, t, :] @ wih + h @ whh + b)
        ys.append(jnp.tanh(h @ wd + bd))
    return jnp.stack(ys, axis=1), h[None]


if __name__ == "__main__":
    key = jax.random.PRNGKey(0)
    k_param, k_x = jax.random.split(key)

    B, T = 2, 8
    params = init_params(k_param)

    # sine-wave style input (like the original script), deterministic phase from PRNGKey(0)
    phase = jax.random.uniform(k_x, (B, 1), jnp.float32, 0.0, 10.0)
    tgrid = jnp.linspace(-2.0 * jnp.pi, 2.0 * jnp.pi, T, dtype=jnp.float32)[None, :]
    x = jnp.sin(tgrid + phase)[:, :, None]            # (B, T, 1)

    y_out, h_state = rnn_forward(x, params, prev_hidden=None)
    y_out = jax.block_until_ready(y_out)
    h_state = jax.block_until_ready(h_state)

    y_ref, h_ref = rnn_reference(x, params, prev_hidden=None)
    assert y_out.shape == (B, T, 1) and h_state.shape == (1, B, HIDDEN)
    assert jnp.allclose(y_out, y_ref, atol=1e-5, rtol=1e-5)
    assert jnp.allclose(h_state, h_ref, atol=1e-5, rtol=1e-5)

    # second call with a caller-provided prev_hidden (no buffer donation on that path)
    y_out2, h_state2 = rnn_forward(x, params, prev_hidden=h_state)
    y_out2 = jax.block_until_ready(y_out2)
    y_ref2, h_ref2 = rnn_reference(x, params, prev_hidden=h_state)
    assert jnp.allclose(y_out2, y_ref2, atol=1e-5, rtol=1e-5)
    assert jnp.allclose(h_state2, h_ref2, atol=1e-5, rtol=1e-5)

    print("KERNEL_OK")
</pallas_src>

<mosaic_0001>
module attributes {stable_mosaic.version = 11 : i64} {
  func.func @rnn_kernel(%arg0: memref<2x8xf32, #tpu.memory_space<vmem>>, %arg1: memref<1x32xf32, #tpu.memory_space<vmem>>, %arg2: memref<32x32xf32, #tpu.memory_space<vmem>>, %arg3: memref<1x32xf32, #tpu.memory_space<vmem>>, %arg4: memref<2x32xf32, #tpu.memory_space<vmem>>, %arg5: memref<1x32xf32, #tpu.memory_space<vmem>>, %arg6: memref<1x1xf32, #tpu.memory_space<vmem>>, %arg7: memref<2x8xf32, #tpu.memory_space<vmem>>, %arg8: memref<2x32xf32, #tpu.memory_space<vmem>>) attributes {dimension_semantics = [], scalar_prefetch = 0 : i64, scratch_operands = 0 : i64, tpu.core_type = #tpu.core_type<tc>} {
    %c0 = arith.constant 0 : index
    %c0_0 = arith.constant 0 : index
    %0 = vector.load %arg0[%c0, %c0_0] : memref<2x8xf32, #tpu.memory_space<vmem>>, vector<2x8xf32>
    %c0_1 = arith.constant 0 : index
    %c0_2 = arith.constant 0 : index
    %1 = vector.load %arg1[%c0_1, %c0_2] : memref<1x32xf32, #tpu.memory_space<vmem>>, vector<1x32xf32>
    %c0_3 = arith.constant 0 : index
    %c0_4 = arith.constant 0 : index
    %2 = vector.load %arg2[%c0_3, %c0_4] : memref<32x32xf32, #tpu.memory_space<vmem>>, vector<32x32xf32>
    %c0_5 = arith.constant 0 : index
    %c0_6 = arith.constant 0 : index
    %3 = vector.load %arg3[%c0_5, %c0_6] : memref<1x32xf32, #tpu.memory_space<vmem>>, vector<1x32xf32>
    %c0_7 = arith.constant 0 : index
    %c0_8 = arith.constant 0 : index
    %4 = vector.load %arg5[%c0_7, %c0_8] : memref<1x32xf32, #tpu.memory_space<vmem>>, vector<1x32xf32>
    %c0_9 = arith.constant 0 : index
    %c0_10 = arith.constant 0 : index
    %5 = vector.load %arg6[%c0_9, %c0_10] : memref<1x1xf32, #tpu.memory_space<vmem>>, vector<1x1xf32>
    %6 = vector.extract_strided_slice %0 {offsets = [0, 0], sizes = [2, 1], strides = [1, 1]} : vector<2x8xf32> to vector<2x1xf32>
    %7 = vector.broadcast %6 : vector<2x1xf32> to vector<2x32xf32>
    %8 = vector.broadcast %1 : vector<1x32xf32> to vector<2x32xf32>
    %9 = arith.mulf %7, %8 : vector<2x32xf32>
    %10 = vector.broadcast %3 : vector<1x32xf32> to vector<2x32xf32>
    %11 = arith.addf %9, %10 : vector<2x32xf32>
    %12 = vector.extract_strided_slice %0 {offsets = [0, 1], sizes = [2, 1], strides = [1, 1]} : vector<2x8xf32> to vector<2x1xf32>
    %13 = vector.broadcast %12 : vector<2x1xf32> to vector<2x32xf32>
    %14 = vector.broadcast %1 : vector<1x32xf32> to vector<2x32xf32>
    %15 = arith.mulf %13, %14 : vector<2x32xf32>
    %16 = vector.broadcast %3 : vector<1x32xf32> to vector<2x32xf32>
    %17 = arith.addf %15, %16 : vector<2x32xf32>
    %18 = vector.extract_strided_slice %0 {offsets = [0, 2], sizes = [2, 1], strides = [1, 1]} : vector<2x8xf32> to vector<2x1xf32>
    %19 = vector.broadcast %18 : vector<2x1xf32> to vector<2x32xf32>
    %20 = vector.broadcast %1 : vector<1x32xf32> to vector<2x32xf32>
    %21 = arith.mulf %19, %20 : vector<2x32xf32>
    %22 = vector.broadcast %3 : vector<1x32xf32> to vector<2x32xf32>
    %23 = arith.addf %21, %22 : vector<2x32xf32>
    %24 = vector.extract_strided_slice %0 {offsets = [0, 3], sizes = [2, 1], strides = [1, 1]} : vector<2x8xf32> to vector<2x1xf32>
    %25 = vector.broadcast %24 : vector<2x1xf32> to vector<2x32xf32>
    %26 = vector.broadcast %1 : vector<1x32xf32> to vector<2x32xf32>
    %27 = arith.mulf %25, %26 : vector<2x32xf32>
    %28 = vector.broadcast %3 : vector<1x32xf32> to vector<2x32xf32>
    %29 = arith.addf %27, %28 : vector<2x32xf32>
    %30 = vector.extract_strided_slice %0 {offsets = [0, 4], sizes = [2, 1], strides = [1, 1]} : vector<2x8xf32> to vector<2x1xf32>
    %31 = vector.broadcast %30 : vector<2x1xf32> to vector<2x32xf32>
    %32 = vector.broadcast %1 : vector<1x32xf32> to vector<2x32xf32>
    %33 = arith.mulf %31, %32 : vector<2x32xf32>
    %34 = vector.broadcast %3 : vector<1x32xf32> to vector<2x32xf32>
    %35 = arith.addf %33, %34 : vector<2x32xf32>
    %36 = vector.extract_strided_slice %0 {offsets = [0, 5], sizes = [2, 1], strides = [1, 1]} : vector<2x8xf32> to vector<2x1xf32>
    %37 = vector.broadcast %36 : vector<2x1xf32> to vector<2x32xf32>
    %38 = vector.broadcast %1 : vector<1x32xf32> to vector<2x32xf32>
    %39 = arith.mulf %37, %38 : vector<2x32xf32>
    %40 = vector.broadcast %3 : vector<1x32xf32> to vector<2x32xf32>
    %41 = arith.addf %39, %40 : vector<2x32xf32>
    %42 = vector.extract_strided_slice %0 {offsets = [0, 6], sizes = [2, 1], strides = [1, 1]} : vector<2x8xf32> to vector<2x1xf32>
    %43 = vector.broadcast %42 : vector<2x1xf32> to vector<2x32xf32>
    %44 = vector.broadcast %1 : vector<1x32xf32> to vector<2x32xf32>
    %45 = arith.mulf %43, %44 : vector<2x32xf32>
    %46 = vector.broadcast %3 : vector<1x32xf32> to vector<2x32xf32>
    %47 = arith.addf %45, %46 : vector<2x32xf32>
    %48 = vector.extract_strided_slice %0 {offsets = [0, 7], sizes = [2, 1], strides = [1, 1]} : vector<2x8xf32> to vector<2x1xf32>
    %49 = vector.broadcast %48 : vector<2x1xf32> to vector<2x32xf32>
    %50 = vector.broadcast %1 : vector<1x32xf32> to vector<2x32xf32>
    %51 = arith.mulf %49, %50 : vector<2x32xf32>
    %52 = vector.broadcast %3 : vector<1x32xf32> to vector<2x32xf32>
    %53 = arith.addf %51, %52 : vector<2x32xf32>
    %c0_11 = arith.constant 0 : index
    %c0_12 = arith.constant 0 : index
    %54 = vector.load %arg4[%c0_11, %c0_12] : memref<2x32xf32, #tpu.memory_space<vmem>>, vector<2x32xf32>
    %cst = arith.constant dense<0.000000e+00> : vector<2x32xf32>
    %55 = tpu.matmul %54, %2, %cst {dimension_numbers = #tpu.dot_dimension_numbers<[1], [0], [0], [1], [0, 0, 1, 1], [], []>} : vector<2x32xf32>, vector<32x32xf32>, vector<2x32xf32> -> vector<2x32xf32>
    %56 = arith.addf %11, %55 : vector<2x32xf32>
    %57 = math.tanh %56 : vector<2x32xf32>
    %58 = vector.broadcast %4 : vector<1x32xf32> to vector<2x32xf32>
    %59 = arith.mulf %57, %58 : vector<2x32xf32>
    %cst_13 = arith.constant dense<0.000000e+00> : vector<2xf32>
    %60 = vector.multi_reduction <add>, %59, %cst_13 [1] : vector<2x32xf32> to vector<2xf32>
    %61 = vector.shape_cast %60 : vector<2xf32> to vector<2x1xf32>
    %62 = vector.broadcast %5 : vector<1x1xf32> to vector<2x1xf32>
    %63 = arith.addf %61, %62 : vector<2x1xf32>
    %64 = math.tanh %63 : vector<2x1xf32>
    %cst_14 = arith.constant dense<0.000000e+00> : vector<2x32xf32>
    %65 = tpu.matmul %57, %2, %cst_14 {dimension_numbers = #tpu.dot_dimension_numbers<[1], [0], [0], [1], [0, 0, 1, 1], [], []>} : vector<2x32xf32>, vector<32x32xf32>, vector<2x32xf32> -> vector<2x32xf32>
    %66 = arith.addf %17, %65 : vector<2x32xf32>
    %67 = math.tanh %66 : vector<2x32xf32>
    %68 = vector.broadcast %4 : vector<1x32xf32> to vector<2x32xf32>
    %69 = arith.mulf %67, %68 : vector<2x32xf32>
    %cst_15 = arith.constant dense<0.000000e+00> : vector<2xf32>
    %70 = vector.multi_reduction <add>, %69, %cst_15 [1] : vector<2x32xf32> to vector<2xf32>
    %71 = vector.shape_cast %70 : vector<2xf32> to vector<2x1xf32>
    %72 = vector.broadcast %5 : vector<1x1xf32> to vector<2x1xf32>
    %73 = arith.addf %71, %72 : vector<2x1xf32>
    %74 = math.tanh %73 : vector<2x1xf32>
    %cst_16 = arith.constant dense<0.000000e+00> : vector<2x32xf32>
    %75 = tpu.matmul %67, %2, %cst_16 {dimension_numbers = #tpu.dot_dimension_numbers<[1], [0], [0], [1], [0, 0, 1, 1], [], []>} : vector<2x32xf32>, vector<32x32xf32>, vector<2x32xf32> -> vector<2x32xf32>
    %76 = arith.addf %23, %75 : vector<2x32xf32>
    %77 = math.tanh %76 : vector<2x32xf32>
    %78 = vector.broadcast %4 : vector<1x32xf32> to vector<2x32xf32>
    %79 = arith.mulf %77, %78 : vector<2x32xf32>
    %cst_17 = arith.constant dense<0.000000e+00> : vector<2xf32>
    %80 = vector.multi_reduction <add>, %79, %cst_17 [1] : vector<2x32xf32> to vector<2xf32>
    %81 = vector.shape_cast %80 : vector<2xf32> to vector<2x1xf32>
    %82 = vector.broadcast %5 : vector<1x1xf32> to vector<2x1xf32>
    %83 = arith.addf %81, %82 : vector<2x1xf32>
    %84 = math.tanh %83 : vector<2x1xf32>
    %cst_18 = arith.constant dense<0.000000e+00> : vector<2x32xf32>
    %85 = tpu.matmul %77, %2, %cst_18 {dimension_numbers = #tpu.dot_dimension_numbers<[1], [0], [0], [1], [0, 0, 1, 1], [], []>} : vector<2x32xf32>, vector<32x32xf32>, vector<2x32xf32> -> vector<2x32xf32>
    %86 = arith.addf %29, %85 : vector<2x32xf32>
    %87 = math.tanh %86 : vector<2x32xf32>
    %88 = vector.broadcast %4 : vector<1x32xf32> to vector<2x32xf32>
    %89 = arith.mulf %87, %88 : vector<2x32xf32>
    %cst_19 = arith.constant dense<0.000000e+00> : vector<2xf32>
    %90 = vector.multi_reduction <add>, %89, %cst_19 [1] : vector<2x32xf32> to vector<2xf32>
    %91 = vector.shape_cast %90 : vector<2xf32> to vector<2x1xf32>
    %92 = vector.broadcast %5 : vector<1x1xf32> to vector<2x1xf32>
    %93 = arith.addf %91, %92 : vector<2x1xf32>
    %94 = math.tanh %93 : vector<2x1xf32>
    %cst_20 = arith.constant dense<0.000000e+00> : vector<2x32xf32>
    %95 = tpu.matmul %87, %2, %cst_20 {dimension_numbers = #tpu.dot_dimension_numbers<[1], [0], [0], [1], [0, 0, 1, 1], [], []>} : vector<2x32xf32>, vector<32x32xf32>, vector<2x32xf32> -> vector<2x32xf32>
    %96 = arith.addf %35, %95 : vector<2x32xf32>
    %97 = math.tanh %96 : vector<2x32xf32>
    %98 = vector.broadcast %4 : vector<1x32xf32> to vector<2x32xf32>
    %99 = arith.mulf %97, %98 : vector<2x32xf32>
    %cst_21 = arith.constant dense<0.000000e+00> : vector<2xf32>
    %100 = vector.multi_reduction <add>, %99, %cst_21 [1] : vector<2x32xf32> to vector<2xf32>
    %101 = vector.shape_cast %100 : vector<2xf32> to vector<2x1xf32>
    %102 = vector.broadcast %5 : vector<1x1xf32> to vector<2x1xf32>
    %103 = arith.addf %101, %102 : vector<2x1xf32>
    %104 = math.tanh %103 : vector<2x1xf32>
    %cst_22 = arith.constant dense<0.000000e+00> : vector<2x32xf32>
    %105 = tpu.matmul %97, %2, %cst_22 {dimension_numbers = #tpu.dot_dimension_numbers<[1], [0], [0], [1], [0, 0, 1, 1], [], []>} : vector<2x32xf32>, vector<32x32xf32>, vector<2x32xf32> -> vector<2x32xf32>
    %106 = arith.addf %41, %105 : vector<2x32xf32>
    %107 = math.tanh %106 : vector<2x32xf32>
    %108 = vector.broadcast %4 : vector<1x32xf32> to vector<2x32xf32>
    %109 = arith.mulf %107, %108 : vector<2x32xf32>
    %cst_23 = arith.constant dense<0.000000e+00> : vector<2xf32>
    %110 = vector.multi_reduction <add>, %109, %cst_23 [1] : vector<2x32xf32> to vector<2xf32>
    %111 = vector.shape_cast %110 : vector<2xf32> to vector<2x1xf32>
    %112 = vector.broadcast %5 : vector<1x1xf32> to vector<2x1xf32>
    %113 = arith.addf %111, %112 : vector<2x1xf32>
    %114 = math.tanh %113 : vector<2x1xf32>
    %cst_24 = arith.constant dense<0.000000e+00> : vector<2x32xf32>
    %115 = tpu.matmul %107, %2, %cst_24 {dimension_numbers = #tpu.dot_dimension_numbers<[1], [0], [0], [1], [0, 0, 1, 1], [], []>} : vector<2x32xf32>, vector<32x32xf32>, vector<2x32xf32> -> vector<2x32xf32>
    %116 = arith.addf %47, %115 : vector<2x32xf32>
    %117 = math.tanh %116 : vector<2x32xf32>
    %118 = vector.broadcast %4 : vector<1x32xf32> to vector<2x32xf32>
    %119 = arith.mulf %117, %118 : vector<2x32xf32>
    %cst_25 = arith.constant dense<0.000000e+00> : vector<2xf32>
    %120 = vector.multi_reduction <add>, %119, %cst_25 [1] : vector<2x32xf32> to vector<2xf32>
    %121 = vector.shape_cast %120 : vector<2xf32> to vector<2x1xf32>
    %122 = vector.broadcast %5 : vector<1x1xf32> to vector<2x1xf32>
    %123 = arith.addf %121, %122 : vector<2x1xf32>
    %124 = math.tanh %123 : vector<2x1xf32>
    %cst_26 = arith.constant dense<0.000000e+00> : vector<2x32xf32>
    %125 = tpu.matmul %117, %2, %cst_26 {dimension_numbers = #tpu.dot_dimension_numbers<[1], [0], [0], [1], [0, 0, 1, 1], [], []>} : vector<2x32xf32>, vector<32x32xf32>, vector<2x32xf32> -> vector<2x32xf32>
    %126 = arith.addf %53, %125 : vector<2x32xf32>
    %127 = math.tanh %126 : vector<2x32xf32>
    %128 = vector.broadcast %4 : vector<1x32xf32> to vector<2x32xf32>
    %129 = arith.mulf %127, %128 : vector<2x32xf32>
    %cst_27 = arith.constant dense<0.000000e+00> : vector<2xf32>
    %130 = vector.multi_reduction <add>, %129, %cst_27 [1] : vector<2x32xf32> to vector<2xf32>
    %131 = vector.shape_cast %130 : vector<2xf32> to vector<2x1xf32>
    %132 = vector.broadcast %5 : vector<1x1xf32> to vector<2x1xf32>
    %133 = arith.addf %131, %132 : vector<2x1xf32>
    %134 = math.tanh %133 : vector<2x1xf32>
    %c0_28 = arith.constant 0 : index
    %c0_29 = arith.constant 0 : index
    %135 = vector.load %arg8[%c0_28, %c0_29] : memref<2x32xf32, #tpu.memory_space<vmem>>, vector<2x32xf32>
    tpu.vector_store %arg8[%c0_28, %c0_29], %127 {strides = array<i32>} : memref<2x32xf32, #tpu.memory_space<vmem>>, vector<2x32xf32>,
    %136 = tpu.concatenate %64, %74, %84, %94, %104, %114, %124, %134 in 1 : vector<2x1xf32>, vector<2x1xf32>, vector<2x1xf32>, vector<2x1xf32>, vector<2x1xf32>, vector<2x1xf32>, vector<2x1xf32>, vector<2x1xf32> -> vector<2x8xf32>
    %c0_30 = arith.constant 0 : index
    %c0_31 = arith.constant 0 : index
    %137 = vector.load %arg7[%c0_30, %c0_31] : memref<2x8xf32, #tpu.memory_space<vmem>>, vector<2x8xf32>
    tpu.vector_store %arg7[%c0_30, %c0_31], %136 {strides = array<i32>} : memref<2x8xf32, #tpu.memory_space<vmem>>, vector<2x8xf32>,
    return
  }
}

</mosaic_0001>

<bundles_post_ra>
// kernel: tpu_custom_call.1
= control target key start
LH: loop header
LB: loop body
LE: loop exit
PB: predicated region body
PF: predicated region fallthrough
CT: control target
= control target key end

     0   :  { %s1412_s0 = inlined_call_operand.vmem [shape: f32[2,8], index: 0, kind: input, shape index: {}]   ;;  %s1413_s1 = inlined_call_operand.vmem [shape: f32[1,32], index: 1, kind: input, shape index: {}]   ;;  %s1414_s2 = inlined_call_operand.hbm [shape: f32[32,32], index: 2, kind: input, shape index: {}]   ;;  %s1415_s3 = inlined_call_operand.vmem [shape: f32[1,32], index: 3, kind: input, shape index: {}]   ;;  %s1416_s4 = inlined_call_operand.hbm [shape: f32[2,32], index: 4, kind: input, shape index: {}, may-alias: {4,8}]   ;;  %s1417_s5 = inlined_call_operand.vmem [shape: f32[1,32], index: 5, kind: input, shape index: {}]   ;;  %s1418_s6 = inlined_call_operand.<no memory space> [shape: f32[1,1], index: 6, kind: input, shape index: {}]   ;;  %s1419_s7 = inlined_call_operand.hbm [shape: f32[2,8], index: 7, kind: output, shape index: {0}]   ;;  %s1420_s8 = inlined_call_operand.hbm [shape: f32[2,32], index: 8, kind: output, shape index: {1}, may-alias: {4,8}]  }
   0x1   :  { %v14_v0 = vstv %s1418_s6 }
   0x2   :  { %15 = vst [vmem:[#allocation2] sm:$0x1] %v14_v0 }
   0x3   :  { %16 = vsyncpa [#allocation4], 0 }
   0x4   :  { %17 = vsyncpa [#allocation7], 0 }
   0x5   :  { %18 = vsyncpa [#allocation5], 0 }
   0x6   :  { %19 = vsyncpa [#allocation10], 0  ;;  %s1158_s29 = smov [#allocation3]  }
   0x7   :  { %s29_s30 = sshll.u32 %s1158_s29, 4  ;;  %s30_s30 = int_to_ptr.vmem [resolvable:$true] %s29_s30 }
   0x8   :  { %s1078_s9 = scalar_lea.vmem %s30_s30, 512  ;;  %p1083_p1 = scmp.lt.s32.totalorder %s30_s30, %s30_s30 }
   0x9   :  { %p1079_p0 = scmp.ne.s32.totalorder %s30_s30, %s1078_s9  ;;  %p1084_p2 = scmp.lt.s32.totalorder %s1078_s9, %s1078_s9 }
   0xb   :  { %p1085_p3 = por %p1084_p2, %p1083_p1 }
   0xd   :  { %p1086_p4 = pnand %p1085_p3, %p1079_p0 }
   0xf   :  { %1089 = shalt.err (!%p1086_p4)
}
  0x10   :  { %s1159_s10 = smov 128   ;;  %s1160_s11 = smov 8  }
  0x11   :  { %35 = dma.hbm_to_vmem [thread:$0]  %s1414_s2, 512, %s30_s30, [#allocation4], %s1159_s10, %s1159_s10, %s1160_s11  }
  0x12   :  { %s1161_s6 = smov [#allocation6]  }
  0x13   :  { %s44_s14 = sshll.u32 %s1161_s6, 4  ;;  %s45_s14 = int_to_ptr.vmem [resolvable:$true] %s44_s14 }
  0x14   :  { %s1098_s15 = scalar_lea.vmem %s45_s14, 32  ;;  %p1103_p6 = scmp.lt.s32.totalorder %s45_s14, %s45_s14 }
  0x15   :  { %p1099_p5 = scmp.ne.s32.totalorder %s45_s14, %s1098_s15  ;;  %p1104_p7 = scmp.lt.s32.totalorder %s1098_s15, %s1098_s15 }
  0x17   :  { %p1105_p8 = por %p1104_p7, %p1103_p6 }
  0x19   :  { %p1106_p9 = pnand %p1105_p8, %p1099_p5 }
  0x1b   :  { %1109 = shalt.err (!%p1106_p9)
}
  0x1c   :  { %47 = dma.hbm_to_vmem [thread:$0]  %s1416_s4, 32, %s45_s14, [#allocation7]  }
  0x1d   :  { %1150 = dma.done.wait [#allocation4], 512  }
  0x1e   :  { %1151 = vsyncadd [#allocation4], 4294966784 }
  0x1f   :  { %1152 = dma.done.wait [#allocation7], 32  }
  0x20   :  { %1153 = vsyncadd [#allocation7], 4294967264  ;;  %v1162_v1 = vmov 0.0   ;;  %vm1163_vm0 = vmmov 0   ;;  %v1164_v2 = vmov 0   ;;  %v1241_v3 = vld [vmem:[#allocation3 + $0x18] sm:$0xff] }
  0x21   :  { %918 = vmatprep.subr.mxu0 %v1162_v1  ;;  %926 = vmatprep.mubr.msk.f32.mxu0 %vm1163_vm0, %v1162_v1  ;;  %v1243_v4 = vld [vmem:[#allocation3 + $0x10] sm:$0xff]  ;;  %v1249_v5 = vld [vmem:[%s1412_s0] sm:$0x3]  ;;  %v1253_v6 = vld [vmem:[#allocation3 + $0x8] sm:$0xff]  ;;  %vm129_vm1 = vcmask 261120   ;;  %v1165_v9 = vmov 1  }
  0x22   :  { %1029 = vset.pattern.permute.xlu0 %v1164_v2  ;;  %929 = vmatprep.subr.mxu1 %v1162_v1  ;;  %v1259_v7 = vld [vmem:[#allocation3] sm:$0xff]  ;;  %v1166_v10 = vmov 5   ;;  %v1287_v11 = vld [vmem:[%s1413_s1] ss:$0 sm:$0xff]  ;;  %v1167_v20 = vmov 2   ;;  %vm212_vm2 = vcmask 254976  }
  0x23   :  { %937 = vmatprep.mubr.msk.f32.mxu1 %vm1163_vm0, %v1162_v1  ;;  %919 = vmatpush3.msra.mxu0 %v1241_v3  ;;  %v128_v8 = vld [vmem:[#allocation6] sm:$0x3]  ;;  %v1293_v14 = vld [vmem:[%s1415_s3] ss:$0 sm:$0xff]  ;;  %v1168_v31 = vmov 3   ;;  %v1169_v32 = vmov 7  }
  0x24   :  { %930 = vmatpush3.msra.mxu1 %v1241_v3  ;;  %920 = vmatprep.subr.mxu0 %v1162_v1  ;;  %v1316_v28 = vld [vmem:[%s1417_s5] ss:$0 sm:$0xff]  ;;  %v1170_v33 = vmov 4   ;;  %v1171_v34 = vmov 6   ;;  %s1172_s5 = smov 2   ;;  %s1173_s21 = smov 5  }
  0x25   :  { %69 = vperm.xlu0 %1029, %v1249_v5   ;;  %921 = vmatpush3.msra.mxu0 %v1243_v4  ;;  %s1174_s22 = smov 1   ;;  %s1175_s23 = smov 3  }
  0x26   :  { %931 = vmatprep.subr.mxu1 %v1162_v1  ;;  %922 = vmatprep.subr.mxu0 %v1162_v1  ;;  %s1176_s24 = smov 4   ;;  %s1177_s25 = smov 6  }
  0x27   :  { %932 = vmatpush3.msra.mxu1 %v1243_v4  ;;  %923 = vmatpush3.msra.mxu0 %v1253_v6  ;;  %s1178_s26 = smov [#allocation9]  }
  0x28   :  { %933 = vmatprep.subr.mxu1 %v1162_v1  ;;  %924 = vmatprep.subr.mxu0 %v1162_v1  ;;  %s852_s27 = sshll.u32 %s1178_s26, 4  ;;  %s853_s27 = int_to_ptr.vmem [resolvable:$true] %s852_s27 }
  0x29   :  { %934 = vmatpush3.msra.mxu1 %v1253_v6  ;;  %925 = vmatpush3.msra.mxu0 %v1259_v7  ;;  %s1110_s28 = scalar_lea.vmem %s853_s27, 32  ;;  %p1115_p11 = scmp.lt.s32.totalorder %s853_s27, %s853_s27 }
  0x2a   :  { %935 = vmatprep.subr.mxu1 %v1162_v1  ;;  %927 = vmatmul.mubr.msk.f32.vlgmr.msra.gmra.mxu0 %vm129_vm1, %v128_v8  ;;  %p1111_p10 = scmp.ne.s32.totalorder %s853_s27, %s1110_s28  ;;  %p1116_p12 = scmp.lt.s32.totalorder %s1110_s28, %s1110_s28 }
  0x2b   :  { %936 = vmatpush3.msra.mxu1 %v1259_v7  ;;  %940 = vmatprep.subr.mxu0 %v1162_v1 }
  0x2c   :  { %948 = vmatprep.mubr.msk.f32.mxu0 %vm1163_vm0, %v1162_v1  ;;  %941 = vmatpush3.msra.mxu0 %v1241_v3  ;;  %p1117_p13 = por %p1116_p12, %p1115_p11 }
  0x2d   :  { %951 = vmatprep.subr.mxu1 %v1162_v1  ;;  %942 = vmatprep.subr.mxu0 %v1162_v1 }
  0x2e   :  { %943 = vmatpush3.msra.mxu0 %v1243_v4  ;;  %1030 = vset.pattern.permute.xlu0 %v1165_v9  ;;  %p1118_p0 = pnand %p1117_p13, %p1111_p10 }
  0x2f   :  { %944 = vmatprep.subr.mxu0 %v1162_v1  ;;  %87 = vperm.xlu0 %1030, %v1249_v5  }
  0x30   :  { %945 = vmatpush3.msra.mxu0 %v1253_v6  ;;  %1031 = vset.pattern.permute.xlu1 %v1167_v20 }
  0x31   :  { %946 = vmatprep.subr.mxu0 %v1162_v1  ;;  %93 = vperm.xlu1 %1031, %v1249_v5  }
  0x32   :  { %947 = vmatpush3.msra.mxu0 %v1259_v7 }
  0x33   :  { %962 = vmatprep.subr.mxu0 %v1162_v1  ;;  %1034 = vset.pattern.permute.xlu0 %v1166_v10 }
  0x34   :  { %111 = vperm.xlu0 %1034, %v1249_v5  }
  0x35   :  { %1032 = vset.pattern.permute.xlu1 %v1168_v31 }
  0x36   :  { %99 = vperm.xlu1 %1032, %v1249_v5  }
  0x38   :  { %1037 = vset.pattern.permute.xlu0 %v1169_v32 }
  0x3a   :  { %1033 = vset.pattern.permute.xlu1 %v1170_v33 }
  0x3b   :  { %105 = vperm.xlu1 %1033, %v1249_v5  }
  0x3f   :  { %1035 = vset.pattern.permute.xlu1 %v1171_v34 }
  0x40   :  { %117 = vperm.xlu1 %1035, %v1249_v5  }
  0x44   :  { %1036 = vset.pattern.permute.xlu1 %v1169_v32 }
  0x45   :  { %123 = vperm.xlu1 %1036, %v1249_v5  }
  0xa0   :  { %v70_v12 = vpop.permute.xlu0 %69 }
  0xa1   :  { %v78_v13 = vmul.f32 %v1287_v11, %v70_v12 }
  0xa3   :  { %v85_v15 = vadd.f32 %v1293_v14, %v78_v13 }
  0xaa   :  { %v88_v21 = vpop.permute.xlu0 %87 }
  0xab   :  { %v90_v22 = vmul.f32 %v1287_v11, %v88_v21 }
  0xac   :  { %v94_v35 = vpop.permute.xlu1 %93 }
  0xad   :  { %v91_v23 = vadd.f32 %v1293_v14, %v90_v22  ;;  %v96_v36 = vmul.f32 %v1287_v11, %v94_v35 }
  0xaf   :  { %v97_v37 = vadd.f32 %v1293_v14, %v96_v36  ;;  %v112_v62 = vpop.permute.xlu0 %111 }
  0xb0   :  { %v114_v63 = vmul.f32 %v1287_v11, %v112_v62 }
  0xb1   :  { %v100_v44 = vpop.permute.xlu1 %99 }
  0xb2   :  { %v102_v45 = vmul.f32 %v1287_v11, %v100_v44  ;;  %v115_v0 = vadd.f32 %v1293_v14, %v114_v63 }
  0xb4   :  { %v103_v46 = vadd.f32 %v1293_v14, %v102_v45 }
  0xb6   :  { %v106_v53 = vpop.permute.xlu1 %105 }
  0xb7   :  { %v108_v54 = vmul.f32 %v1287_v11, %v106_v53 }
  0xb9   :  { %v109_v55 = vadd.f32 %v1293_v14, %v108_v54 }
  0xea   :  { %v199_v16 = vpop.f32.mrf.mxu0 }
  0xeb   :  { %v203_v17 = vadd.f32 %v199_v16, %v85_v15 }
  0xec   :  { %v928_v18 = vpop.f32.mrf.mxu0 }
  0xed   :  { %1038 = vtanh.f32 %v203_v17 }
  0xfa   :  { %v1296_v19 = vpop.eup %1038 }
  0xfb   :  { %938 = vmatmul.mubr.msk.f32.vlgmr.msra.gmra.mxu1 %vm129_vm1, %v1296_v19  ;;  %v211_v20 = vmul.f32 %v1296_v19, %v1316_v28 }
  0xfc   :  { %952 = vmatpush3.msra.mxu1 %v1241_v3  ;;  %959 = vmatprep.mubr.msk.f32.mxu1 %vm1163_vm0, %v1162_v1 }
  0xfd   :  { %953 = vmatprep.subr.mxu1 %v1162_v1  ;;  %v213_v21 = vsel %vm212_vm2, %v211_v20, 0.0 }
  0xfe   :  { %954 = vmatpush3.msra.mxu1 %v1243_v4 }
  0xff   :  { %955 = vmatprep.subr.mxu1 %v1162_v1 }
 0x100   :  { %956 = vmatpush3.msra.mxu1 %v1253_v6 }
 0x101   :  { %957 = vmatprep.subr.mxu1 %v1162_v1 }
 0x102   :  { %958 = vmatpush3.msra.mxu1 %v1259_v7 }
 0x103   :  { %973 = vmatprep.subr.mxu1 %v1162_v1 }
 0x1bb   :  { %v293_v24 = vpop.f32.mrf.mxu1 }
 0x1bc   :  { %v297_v25 = vadd.f32 %v293_v24, %v91_v23  ;;  %v1391_v23 = vld [vmem:[#allocation2] ss:$0 sm:$0xff] }
 0x1bd   :  { %v939_v26 = vpop.f32.mrf.mxu1 }
 0x1be   :  { %1040 = vtanh.f32 %v297_v25 }
 0x1cb   :  { %v1041_v27 = vpop.eup %1040 }
 0x1cc   :  { %949 = vmatmul.mubr.msk.f32.vlgmr.msra.gmra.mxu0 %vm129_vm1, %v1041_v27  ;;  %v299_v29 = vmul.f32 %v1041_v27, %v1316_v28 }
 0x1cd   :  { %963 = vmatpush3.msra.mxu0 %v1241_v3  ;;  %970 = vmatprep.mubr.msk.f32.mxu0 %vm1163_vm0, %v1162_v1 }
 0x1ce   :  { %v300_v30 = vsel %vm212_vm2, %v299_v29, 0.0  ;;  %964 = vmatprep.subr.mxu0 %v1162_v1 }
 0x1cf   :  { %301 = vadd.xlane.f32.xlu0 %v300_v30  ;;  %965 = vmatpush3.msra.mxu0 %v1243_v4 }
 0x1d0   :  { %966 = vmatprep.subr.mxu0 %v1162_v1 }
 0x1d1   :  { %967 = vmatpush3.msra.mxu0 %v1253_v6 }
 0x1d2   :  { %968 = vmatprep.subr.mxu0 %v1162_v1 }
 0x1d3   :  { %969 = vmatpush3.msra.mxu0 %v1259_v7 }
 0x1d4   :  { %984 = vmatprep.subr.mxu0 %v1162_v1 }
 0x258   :  { %v302_v35 = vpop.xlane.xlu0 %301 }
 0x28c   :  { %v374_v38 = vpop.f32.mrf.mxu0 }
 0x28d   :  { %v378_v39 = vadd.f32 %v374_v38, %v97_v37  ;;  %v303_v37 = vadd.f32 %v1391_v23, %v302_v35 }
 0x28e   :  { %v950_v40 = vpop.f32.mrf.mxu0 }
 0x28f   :  { %1042 = vtanh.f32 %v378_v39 }
 0x29c   :  { %v1043_v41 = vpop.eup %1042 }
 0x29d   :  { %960 = vmatmul.mubr.msk.f32.vlgmr.msra.gmra.mxu1 %vm129_vm1, %v1043_v41  ;;  %v380_v42 = vmul.f32 %v1043_v41, %v1316_v28 }
 0x29e   :  { %974 = vmatpush3.msra.mxu1 %v1241_v3  ;;  %981 = vmatprep.mubr.msk.f32.mxu1 %vm1163_vm0, %v1162_v1 }
 0x29f   :  { %v381_v43 = vsel %vm212_vm2, %v380_v42, 0.0  ;;  %975 = vmatprep.subr.mxu1 %v1162_v1 }
 0x2a0   :  { %382 = vadd.xlane.f32.xlu1 %v381_v43  ;;  %976 = vmatpush3.msra.mxu1 %v1243_v4 }
 0x2a1   :  { %977 = vmatprep.subr.mxu1 %v1162_v1 }
 0x2a2   :  { %978 = vmatpush3.msra.mxu1 %v1253_v6 }
 0x2a3   :  { %979 = vmatprep.subr.mxu1 %v1162_v1 }
 0x2a4   :  { %980 = vmatpush3.msra.mxu1 %v1259_v7 }
 0x2a5   :  { %995 = vmatprep.subr.mxu1 %v1162_v1 }
 0x35d   :  { %v455_v47 = vpop.f32.mrf.mxu1 }
 0x35e   :  { %v459_v48 = vadd.f32 %v455_v47, %v103_v46 }
 0x35f   :  { %v961_v49 = vpop.f32.mrf.mxu1 }
 0x360   :  { %1044 = vtanh.f32 %v459_v48 }
 0x36d   :  { %v1045_v50 = vpop.eup %1044 }
 0x36e   :  { %971 = vmatmul.mubr.msk.f32.vlgmr.msra.gmra.mxu0 %vm129_vm1, %v1045_v50  ;;  %v461_v51 = vmul.f32 %v1045_v50, %v1316_v28 }
 0x36f   :  { %985 = vmatpush3.msra.mxu0 %v1241_v3  ;;  %992 = vmatprep.mubr.msk.f32.mxu0 %vm1163_vm0, %v1162_v1 }
 0x370   :  { %v462_v52 = vsel %vm212_vm2, %v461_v51, 0.0  ;;  %986 = vmatprep.subr.mxu0 %v1162_v1 }
 0x371   :  { %463 = vadd.xlane.f32.xlu0 %v462_v52  ;;  %987 = vmatpush3.msra.mxu0 %v1243_v4 }
 0x372   :  { %988 = vmatprep.subr.mxu0 %v1162_v1 }
 0x373   :  { %989 = vmatpush3.msra.mxu0 %v1253_v6 }
 0x374   :  { %990 = vmatprep.subr.mxu0 %v1162_v1 }
 0x375   :  { %991 = vmatpush3.msra.mxu0 %v1259_v7 }
 0x3fa   :  { %v464_v39 = vpop.xlane.xlu0 %463 }
 0x42e   :  { %v536_v56 = vpop.f32.mrf.mxu0 }
 0x42f   :  { %v540_v57 = vadd.f32 %v536_v56, %v109_v55 }
 0x430   :  { %v972_v58 = vpop.f32.mrf.mxu0 }
 0x431   :  { %1046 = vtanh.f32 %v540_v57 }
 0x43e   :  { %v1047_v59 = vpop.eup %1046 }
 0x43f   :  { %982 = vmatmul.mubr.msk.f32.vlgmr.msra.gmra.mxu1 %vm129_vm1, %v1047_v59  ;;  %v542_v60 = vmul.f32 %v1047_v59, %v1316_v28 }
 0x440   :  { %996 = vmatpush3.msra.mxu1 %v1241_v3  ;;  %1003 = vmatprep.mubr.msk.f32.mxu1 %vm1163_vm0, %v1162_v1 }
 0x441   :  { %v543_v61 = vsel %vm212_vm2, %v542_v60, 0.0  ;;  %997 = vmatprep.subr.mxu1 %v1162_v1 }
 0x442   :  { %544 = vadd.xlane.f32.xlu0 %v543_v61  ;;  %998 = vmatpush3.msra.mxu1 %v1243_v4 }
 0x443   :  { %999 = vmatprep.subr.mxu1 %v1162_v1 }
 0x444   :  { %1000 = vmatpush3.msra.mxu1 %v1253_v6 }
 0x445   :  { %1001 = vmatprep.subr.mxu1 %v1162_v1  ;;  %v118_v1 = vpop.permute.xlu1 %117 }
 0x446   :  { %1002 = vmatpush3.msra.mxu1 %v1259_v7  ;;  %v120_v7 = vmul.f32 %v1287_v11, %v118_v1 }
 0x448   :  { %v121_v9 = vadd.f32 %v1293_v14, %v120_v7 }
 0x449   :  { %v124_v17 = vpop.permute.xlu1 %123 }
 0x44a   :  { %v126_v19 = vmul.f32 %v1287_v11, %v124_v17  ;;  %v465_v11 = vadd.f32 %v1391_v23, %v464_v39 }
 0x44c   :  { %v127_v30 = vadd.f32 %v1293_v14, %v126_v19 }
 0x44d   :  { %v383_v22 = vpop.xlane.xlu1 %382 }
 0x44e   :  { %v384_v24 = vadd.f32 %v1391_v23, %v383_v22 }
 0x4cb   :  { %v545_v14 = vpop.xlane.xlu0 %544 }
 0x4cc   :  { %v546_v40 = vadd.f32 %v1391_v23, %v545_v14 }
 0x4ff   :  { %v617_v2 = vpop.f32.mrf.mxu1 }
 0x500   :  { %v621_v3 = vadd.f32 %v617_v2, %v115_v0 }
 0x501   :  { %v983_v5 = vpop.f32.mrf.mxu1 }
 0x502   :  { %1048 = vtanh.f32 %v621_v3 }
 0x50f   :  { %v1049_v8 = vpop.eup %1048 }
 0x510   :  { %993 = vmatmul.mubr.msk.f32.vlgmr.msra.gmra.mxu0 %vm129_vm1, %v1049_v8  ;;  %v623_v4 = vmul.f32 %v1049_v8, %v1316_v28 }
 0x512   :  { %v624_v6 = vsel %vm212_vm2, %v623_v4, 0.0 }
 0x513   :  { %625 = vadd.xlane.f32.xlu1 %v624_v6 }
 0x59c   :  { %v626_v25 = vpop.xlane.xlu1 %625 }
 0x59d   :  { %v627_v26 = vadd.f32 %v1391_v23, %v626_v25 }
 0x5d0   :  { %v698_v10 = vpop.f32.mrf.mxu0 }
 0x5d1   :  { %v702_v12 = vadd.f32 %v698_v10, %v121_v9 }
 0x5d2   :  { %v994_v13 = vpop.f32.mrf.mxu0 }
 0x5d3   :  { %1050 = vtanh.f32 %v702_v12 }
 0x5d4   :  { %1052 = vtanh.f32 %v384_v24 }
 0x5d5   :  { %1054 = vtanh.f32 %v627_v26 }
 0x5e0   :  { %v1051_v15 = vpop.eup %1050 }
 0x5e1   :  { %1004 = vmatmul.mubr.msk.f32.vlgmr.msra.gmra.mxu1 %vm129_vm1, %v1051_v15  ;;  %v704_v16 = vmul.f32 %v1051_v15, %v1316_v28  ;;  %v1053_v27 = vpop.eup %1052 }
 0x5e2   :  { %v1055_v29 = vpop.eup %1054 }
 0x5e3   :  { %v705_v18 = vsel %vm212_vm2, %v704_v16, 0.0 }
 0x5e4   :  { %706 = vadd.xlane.f32.xlu0 %v705_v18 }
 0x5e8   :  { %214 = vadd.xlane.f32.xlu0 %v213_v21 }
 0x5fe   :  { %797 = vrot.lane.b32.xlu0 %v1053_v27, %s1172_s5 }
 0x602   :  { %809 = vrot.lane.b32.xlu0 %v1055_v29, %s1173_s21 }
 0x66d   :  { %v707_v41 = vpop.xlane.xlu0 %706 }
 0x66e   :  { %v708_v42 = vadd.f32 %v1391_v23, %v707_v41 }
 0x6a1   :  { %v779_v31 = vpop.f32.mrf.mxu1 }
 0x6a2   :  { %v783_v32 = vadd.f32 %v779_v31, %v127_v30 }
 0x6a3   :  { %v1005_v33 = vpop.f32.mrf.mxu1 }
 0x6a4   :  { %1056 = vtanh.f32 %v783_v32 }
 0x6a5   :  { %1058 = vtanh.f32 %v303_v37 }
 0x6a6   :  { %1060 = vtanh.f32 %v465_v11 }
 0x6a7   :  { %1062 = vtanh.f32 %v546_v40 }
 0x6a8   :  { %1064 = vtanh.f32 %v708_v42 }
 0x6b1   :  { %v1057_v34 = vpop.eup %1056 }
 0x6b2   :  { %791 = vst.msk [vmem:[#allocation9] sm:$0x3] %vm212_vm2, %v1057_v34  ;;  %v785_v36 = vmul.f32 %v1057_v34, %v1316_v28  ;;  %v1059_v43 = vpop.eup %1058 }
 0x6b3   :  { %v1061_v28 = vpop.eup %1060 }
 0x6b4   :  { %v786_v38 = vsel %vm212_vm2, %v785_v36, 0.0  ;;  %v1063_v44 = vpop.eup %1062 }
 0x6b5   :  { %787 = vadd.xlane.f32.xlu1 %v786_v38  ;;  %v1065_v45 = vpop.eup %1064 }
 0x6c6   :  { %793 = vrot.lane.b32.xlu1 %v1059_v43, %s1174_s22 }
 0x6ca   :  { %801 = vrot.lane.b32.xlu1 %v1061_v28, %s1175_s23 }
 0x6ce   :  { %805 = vrot.lane.b32.xlu1 %v1063_v44, %s1176_s24 }
 0x6d2   :  { %813 = vrot.lane.b32.xlu1 %v1065_v45, %s1177_s25 }
 0x73e   :  { %v788_v46 = vpop.xlane.xlu1 %787 }
 0x73f   :  { %v789_v47 = vadd.f32 %v1391_v23, %v788_v46 }
 0x741   :  { %1066 = vtanh.f32 %v789_v47 }
 0x742   :  { %1121 = shalt.err (!%p1118_p0)
}
 0x743   :  { %855 = dma.vmem_to_hbm [thread:$0]  %s853_s27, 32, %s1420_s8, [#allocation10]   ;;  %v215_v49 = vpop.xlane.xlu0 %214  ;;  %v794_v51 = vpop.permute.xlu1 %793  ;;  %vm820_vm3 = vcmask 7168   ;;  %vm822_vm4 = vcmask 15360   ;;  %vm824_vm5 = vcmask 23552   ;;  %vm826_vm6 = vcmask 31744  }
 0x744   :  { %s1179_s9 = smov 7   ;;  %v222_v50 = vadd.f32 %v1391_v23, %v215_v49  ;;  %vm828_vm7 = vcmask 39936   ;;  %vm830_vm8 = vcmask 48128   ;;  %s1180_s8 = smov [#allocation8]   ;;  %vm832_vm9 = vcmask 56320  }
 0x745   :  { %s842_s10 = sshll.u32 %s1180_s8, 4  ;;  %vm834_vm10 = vcmask 58368   ;;  %s843_s10 = int_to_ptr.vmem [resolvable:$true] %s842_s10 }
 0x746   :  { %1068 = vtanh.f32 %v222_v50  ;;  %s1130_s11 = scalar_lea.vmem %s843_s10, 32  ;;  %p1135_p2 = scmp.lt.s32.totalorder %s843_s10, %s843_s10 }
 0x747   :  { %v802_v52 = vpop.permute.xlu1 %801  ;;  %v798_v54 = vpop.permute.xlu0 %797  ;;  %p1131_p1 = scmp.ne.s32.totalorder %s843_s10, %s1130_s11  ;;  %p1136_p3 = scmp.lt.s32.totalorder %s1130_s11, %s1130_s11 }
 0x749   :  { %p1137_p4 = por %p1136_p3, %p1135_p2 }
 0x74b   :  { %v806_v56 = vpop.permute.xlu1 %805  ;;  %v810_v59 = vpop.permute.xlu0 %809  ;;  %p1138_p5 = pnand %p1137_p4, %p1131_p1 }
 0x74e   :  { %v1067_v48 = vpop.eup %1066 }
 0x74f   :  { %817 = vrot.lane.b32.xlu0 %v1067_v48, %s1179_s9  ;;  %v814_v61 = vpop.permute.xlu1 %813 }
 0x753   :  { %v1069_v53 = vpop.eup %1068 }
 0x754   :  { %v821_v55 = vsel %vm820_vm3, %v1069_v53, %v794_v51 }
 0x755   :  { %v823_v57 = vsel %vm822_vm4, %v821_v55, %v798_v54 }
 0x756   :  { %v825_v58 = vsel %vm824_vm5, %v823_v57, %v802_v52 }
 0x757   :  { %v827_v60 = vsel %vm826_vm6, %v825_v58, %v806_v56 }
 0x758   :  { %v829_v62 = vsel %vm828_vm7, %v827_v60, %v810_v59 }
 0x759   :  { %v831_v63 = vsel %vm830_vm8, %v829_v62, %v814_v61 }
 0x7c1   :  { %v818_v0 = vpop.permute.xlu0 %817 }
 0x7c2   :  { %v833_v2 = vsel %vm832_vm9, %v831_v63, %v818_v0 }
 0x7c3   :  { %835 = vst.msk [vmem:[#allocation8] sm:$0x3] %vm834_vm10, %v833_v2 }
 0x7c4   :  { %1141 = shalt.err (!%p1138_p5)
}
 0x7c5   :  { %845 = dma.vmem_to_hbm [thread:$0]  %s843_s10, 32, %s1419_s7, [#allocation5]  }
 0x7c6   :  { %1154 = dma.done.wait [#allocation5], 32  }
 0x7c7   :  { %1155 = vsyncadd [#allocation5], 4294967264 }
 0x7c8   :  { %1156 = dma.done.wait [#allocation10], 32  }
 0x7c9   :  { %1157 = vsyncadd [#allocation10], 4294967264 }
 0x7ca   :  { %862 = vsyncpa [#allocation4], 1 }
 0x7cb   :  { %863 = vsyncpa [#allocation7], 1 }
 0x7cc   :  { %864 = vsyncpa [#allocation5], 1 }
 0x7cd   :  { %865 = vsyncpa [#allocation10], 1 }

</bundles_post_ra>
